<compile_context>
chip_gen: v7x
topology: tpu7x:2x2x1
jax: 0.10.0
libtpu: 0.0.40
codegen_flags: <defaults>
</compile_context>

<pallas_src>
import math

import jax
import jax.numpy as jnp
from jax import lax
from jax.experimental import pallas as pl
from jax.experimental.pallas import tpu as pltpu


# --------------------------------- kernels ----------------------------------

def _noisy_linear_kernel(x_ref, wmu_ref, wsig_ref, eout_ref, ein_ref,
                         bmu_ref, bsig_ref, beps_ref, o_ref, acc_ref):
    k = pl.program_id(2)

    @pl.when(k == 0)
    def _():
        # Seed the accumulator with the noisy bias row broadcast over the
        # batch tile -> finalize is just a cast+store.
        b = bmu_ref[...] + bsig_ref[...] * beps_ref[...]          # (1, tn)
        acc_ref[...] = jnp.broadcast_to(b, acc_ref.shape)

    # Rebuild the factorized noise on-chip (VPU): (tn,1) * (1,tk) -> (tn,tk).
    w = wmu_ref[...] + wsig_ref[...] * (eout_ref[...] * ein_ref[...])

    # NT matmul on the MXU: contract dim 1 of x with dim 1 of w; no transposed
    # copy of the noisy-weight tile is materialized.
    acc_ref[...] += lax.dot_general(
        x_ref[...], w,
        dimension_numbers=(((1,), (1,)), ((), ())),
        preferred_element_type=jnp.float32)

    @pl.when(k == pl.num_programs(2) - 1)
    def _():
        o_ref[...] = acc_ref[...].astype(o_ref.dtype)


def _plain_linear_kernel(x_ref, wmu_ref, bmu_ref, o_ref, acc_ref):
    # Eval-mode path: y = x @ weight_mu.T + bias_mu  (no noise traffic).
    k = pl.program_id(2)

    @pl.when(k == 0)
    def _():
        acc_ref[...] = jnp.broadcast_to(bmu_ref[...], acc_ref.shape)

    acc_ref[...] += lax.dot_general(
        x_ref[...], wmu_ref[...],
        dimension_numbers=(((1,), (1,)), ((), ())),
        preferred_element_type=jnp.float32)

    @pl.when(k == pl.num_programs(2) - 1)
    def _():
        o_ref[...] = acc_ref[...].astype(o_ref.dtype)


# --------------------------------- wrapper ----------------------------------

def _pick_tile(dim, cap):
    """Largest tile <= cap that keeps the grid exact; fall back to full dim.

    Full-extent blocks are always legal (no (8,128) divisibility needed) and a
    full-K block guarantees no padded-boundary garbage enters the reduction.
    """
    t = min(dim, cap)
    return t if dim % t == 0 else dim


def noisy_linear_forward(x, params, training=True, *, tb=256, tn=256, tk=512):
    """Pallas-backed forward of NoisyLinear.

    x: (B, input_dim) float32
    params: dict with weight_mu/weight_sigma (Out, In), the factorized noise
            vectors weight_eps_in (In,) / weight_eps_out (Out,), and
            bias_mu/bias_sigma/bias_epsilon (Out,).
    """
    B, in_dim = x.shape
    out_dim = params["weight_mu"].shape[0]

    tb = _pick_tile(B, tb)
    tn = _pick_tile(out_dim, tn)
    tk = _pick_tile(in_dim, tk)
    grid = (pl.cdiv(B, tb), pl.cdiv(out_dim, tn), pl.cdiv(in_dim, tk))

    x_spec = pl.BlockSpec((tb, tk), lambda i, j, k: (i, k))
    w_spec = pl.BlockSpec((tn, tk), lambda i, j, k: (j, k))
    brow_spec = pl.BlockSpec((1, tn), lambda i, j, k: (0, j))
    out_spec = pl.BlockSpec((tb, tn), lambda i, j, k: (i, j))

    compiler_params = pltpu.CompilerParams(
        dimension_semantics=("parallel", "parallel", "arbitrary"),
        vmem_limit_bytes=32 * 1024 * 1024)

    b_mu = params["bias_mu"].reshape(1, out_dim)

    if training:
        eps_out = params["weight_eps_out"].reshape(out_dim, 1)
        eps_in = params["weight_eps_in"].reshape(1, in_dim)
        b_sig = params["bias_sigma"].reshape(1, out_dim)
        b_eps = params["bias_epsilon"].reshape(1, out_dim)
        return pl.pallas_call(
            _noisy_linear_kernel,
            out_shape=jax.ShapeDtypeStruct((B, out_dim), x.dtype),
            grid_spec=pltpu.PrefetchScalarGridSpec(
                num_scalar_prefetch=0,
                grid=grid,
                in_specs=[
                    x_spec,                                         # x
                    w_spec,                                         # weight_mu
                    w_spec,                                         # weight_sigma
                    pl.BlockSpec((tn, 1), lambda i, j, k: (j, 0)),  # eps_out
                    pl.BlockSpec((1, tk), lambda i, j, k: (0, k)),  # eps_in
                    brow_spec,                                      # bias_mu
                    brow_spec,                                      # bias_sigma
                    brow_spec,                                      # bias_epsilon
                ],
                out_specs=out_spec,
                scratch_shapes=[pltpu.VMEM((tb, tn), jnp.float32)]),
            compiler_params=compiler_params,
        )(x, params["weight_mu"], params["weight_sigma"],
          eps_out, eps_in, b_mu, b_sig, b_eps)

    # eval: mu-only kernel, ~3x less HBM weight traffic than the noisy path.
    return pl.pallas_call(
        _plain_linear_kernel,
        out_shape=jax.ShapeDtypeStruct((B, out_dim), x.dtype),
        grid_spec=pltpu.PrefetchScalarGridSpec(
            num_scalar_prefetch=0,
            grid=grid,
            in_specs=[x_spec, w_spec, brow_spec],
            out_specs=out_spec,
            scratch_shapes=[pltpu.VMEM((tb, tn), jnp.float32)]),
        compiler_params=compiler_params,
    )(x, params["weight_mu"], b_mu)


# ----------------------- deterministic parameter init -----------------------

def _scale_noise(key, size):
    # x = randn(size); x = sign(x) * sqrt(|x|)   (factorized Gaussian noise)
    x = jax.random.normal(key, (size,), dtype=jnp.float32)
    return jnp.sign(x) * jnp.sqrt(jnp.abs(x))


def init_noisy_linear(key, input_dim, output_dim, std_init=0.4):
    k_wmu, k_bmu, k_ein, k_eout, k_beps = jax.random.split(key, 5)
    mu_range = 1.0 / math.sqrt(input_dim)

    weight_mu = jax.random.uniform(
        k_wmu, (output_dim, input_dim), minval=-mu_range, maxval=mu_range,
        dtype=jnp.float32)
    weight_sigma = jnp.full((output_dim, input_dim),
                            std_init / math.sqrt(input_dim), dtype=jnp.float32)
    bias_mu = jax.random.uniform(
        k_bmu, (output_dim,), minval=-mu_range, maxval=mu_range,
        dtype=jnp.float32)
    bias_sigma = jnp.full((output_dim,),
                          std_init / math.sqrt(output_dim), dtype=jnp.float32)

    # reset_noise(): keep the *factors* of weight_epsilon so the kernel can
    # rebuild outer(eps_out, eps_in) on-chip instead of streaming (Out, In).
    eps_in = _scale_noise(k_ein, input_dim)     # (In,)
    eps_out = _scale_noise(k_eout, output_dim)  # (Out,)
    # Matches the reference module exactly: bias_epsilon is a *fresh*
    # scale-noise draw (the given PyTorch spec does NOT reuse eps_out).
    bias_epsilon = _scale_noise(k_beps, output_dim)

    return dict(weight_mu=weight_mu, weight_sigma=weight_sigma,
                weight_eps_in=eps_in, weight_eps_out=eps_out,
                bias_mu=bias_mu, bias_sigma=bias_sigma,
                bias_epsilon=bias_epsilon)


if __name__ == "__main__":
    key = jax.random.PRNGKey(0)
    k_param, k_x = jax.random.split(key)

    # Small but lane-aligned demo shapes; tk=128 forces a 2-step K reduction
    # so the accumulator init / accumulate / finalize path is exercised.
    batch, input_dim, output_dim = 8, 256, 128
    params = init_noisy_linear(k_param, input_dim, output_dim, std_init=0.4)
    x = jax.random.normal(k_x, (batch, input_dim), dtype=jnp.float32)

    # training-mode forward (noisy weights)
    y_train = jax.block_until_ready(
        noisy_linear_forward(x, params, training=True, tb=8, tn=128, tk=128))
    # eval-mode forward (mu only)
    y_eval = jax.block_until_ready(
        noisy_linear_forward(x, params, training=False, tb=8, tn=128, tk=128))

    # pure-JAX reference check
    w_eps_ref = jnp.outer(params["weight_eps_out"], params["weight_eps_in"])
    w_ref = params["weight_mu"] + params["weight_sigma"] * w_eps_ref
    b_ref = params["bias_mu"] + params["bias_sigma"] * params["bias_epsilon"]
    ref_train = x @ w_ref.T + b_ref
    ref_eval = x @ params["weight_mu"].T + params["bias_mu"]

    assert y_train.shape == (batch, output_dim)
    assert jnp.allclose(y_train, ref_train, atol=1e-5, rtol=1e-5)
    assert y_eval.shape == (batch, output_dim)
    assert jnp.allclose(y_eval, ref_eval, atol=1e-5, rtol=1e-5)

    print("KERNEL_OK")
</pallas_src>

<mosaic_0001>
module attributes {stable_mosaic.version = 11 : i64} {
  func.func @_noisy_linear_kernel(%arg0: i32, %arg1: i32, %arg2: i32, %arg3: memref<8x128xf32, #tpu.memory_space<vmem>>, %arg4: memref<128x128xf32, #tpu.memory_space<vmem>>, %arg5: memref<128x128xf32, #tpu.memory_space<vmem>>, %arg6: memref<128x1xf32, #tpu.memory_space<vmem>>, %arg7: memref<1x128xf32, #tpu.memory_space<vmem>>, %arg8: memref<1x128xf32, #tpu.memory_space<vmem>>, %arg9: memref<1x128xf32, #tpu.memory_space<vmem>>, %arg10: memref<1x128xf32, #tpu.memory_space<vmem>>, %arg11: memref<8x128xf32, #tpu.memory_space<vmem>>, %arg12: memref<8x128xf32, #tpu.memory_space<vmem>>) attributes {dimension_semantics = [#tpu.dimension_semantics<parallel>, #tpu.dimension_semantics<parallel>, #tpu.dimension_semantics<arbitrary>], iteration_bounds = array<i64: 1, 1, 2>, scalar_prefetch = 0 : i64, scratch_operands = 1 : i64, tpu.core_type = #tpu.core_type<tc>, window_params = [{transform_indices = @transform_0, window_bounds = array<i64: 8, 128>}, {transform_indices = @transform_1, window_bounds = array<i64: 128, 128>}, {transform_indices = @transform_2, window_bounds = array<i64: 128, 128>}, {transform_indices = @transform_3, window_bounds = array<i64: 128, 1>}, {transform_indices = @transform_4, window_bounds = array<i64: 1, 128>}, {transform_indices = @transform_5, window_bounds = array<i64: 1, 128>}, {transform_indices = @transform_6, window_bounds = array<i64: 1, 128>}, {transform_indices = @transform_7, window_bounds = array<i64: 1, 128>}, {transform_indices = @transform_8, window_bounds = array<i64: 8, 128>}]} {
    %c0_i32 = arith.constant 0 : i32
    %0 = arith.cmpi eq, %arg2, %c0_i32 : i32
    %1 = arith.extui %0 : i1 to i32
    %c0_i32_0 = arith.constant 0 : i32
    %2 = arith.cmpi ne, %1, %c0_i32_0 : i32
    scf.if %2 {
      %c0_15 = arith.constant 0 : index
      %c0_16 = arith.constant 0 : index
      %20 = vector.load %arg8[%c0_15, %c0_16] : memref<1x128xf32, #tpu.memory_space<vmem>>, vector<1x128xf32>
      %c0_17 = arith.constant 0 : index
      %c0_18 = arith.constant 0 : index
      %21 = vector.load %arg9[%c0_17, %c0_18] : memref<1x128xf32, #tpu.memory_space<vmem>>, vector<1x128xf32>
      %c0_19 = arith.constant 0 : index
      %c0_20 = arith.constant 0 : index
      %22 = vector.load %arg10[%c0_19, %c0_20] : memref<1x128xf32, #tpu.memory_space<vmem>>, vector<1x128xf32>
      %23 = arith.mulf %21, %22 : vector<1x128xf32>
      %24 = arith.addf %20, %23 : vector<1x128xf32>
      %25 = vector.shape_cast %24 : vector<1x128xf32> to vector<1x128xf32>
      %26 = vector.broadcast %25 : vector<1x128xf32> to vector<8x128xf32>
      %c0_21 = arith.constant 0 : index
      %c0_22 = arith.constant 0 : index
      %27 = vector.load %arg12[%c0_21, %c0_22] : memref<8x128xf32, #tpu.memory_space<vmem>>, vector<8x128xf32>
      tpu.vector_store %arg12[%c0_21, %c0_22], %26 {strides = array<i32>} : memref<8x128xf32, #tpu.memory_space<vmem>>, vector<8x128xf32>,
    } else {
    }
    %c0 = arith.constant 0 : index
    %c0_1 = arith.constant 0 : index
    %3 = vector.load %arg4[%c0, %c0_1] : memref<128x128xf32, #tpu.memory_space<vmem>>, vector<128x128xf32>
    %c0_2 = arith.constant 0 : index
    %c0_3 = arith.constant 0 : index
    %4 = vector.load %arg5[%c0_2, %c0_3] : memref<128x128xf32, #tpu.memory_space<vmem>>, vector<128x128xf32>
    %c0_4 = arith.constant 0 : index
    %c0_5 = arith.constant 0 : index
    %5 = vector.load %arg6[%c0_4, %c0_5] : memref<128x1xf32, #tpu.memory_space<vmem>>, vector<128x1xf32>
    %c0_6 = arith.constant 0 : index
    %c0_7 = arith.constant 0 : index
    %6 = vector.load %arg7[%c0_6, %c0_7] : memref<1x128xf32, #tpu.memory_space<vmem>>, vector<1x128xf32>
    %7 = vector.broadcast %5 : vector<128x1xf32> to vector<128x128xf32>
    %8 = vector.broadcast %6 : vector<1x128xf32> to vector<128x128xf32>
    %9 = arith.mulf %7, %8 : vector<128x128xf32>
    %10 = arith.mulf %4, %9 : vector<128x128xf32>
    %11 = arith.addf %3, %10 : vector<128x128xf32>
    %c0_8 = arith.constant 0 : index
    %c0_9 = arith.constant 0 : index
    %12 = vector.load %arg12[%c0_8, %c0_9] : memref<8x128xf32, #tpu.memory_space<vmem>>, vector<8x128xf32>
    %c0_10 = arith.constant 0 : index
    %c0_11 = arith.constant 0 : index
    %13 = vector.load %arg3[%c0_10, %c0_11] : memref<8x128xf32, #tpu.memory_space<vmem>>, vector<8x128xf32>
    %cst = arith.constant dense<0.000000e+00> : vector<8x128xf32>
    %14 = tpu.matmul %13, %11, %cst {dimension_numbers = #tpu.dot_dimension_numbers<[1], [1], [0], [0], [0, 0, 1, 0], [], []>} : vector<8x128xf32>, vector<128x128xf32>, vector<8x128xf32> -> vector<8x128xf32>
    %15 = arith.addf %12, %14 : vector<8x128xf32>
    %c0_12 = arith.constant 0 : index
    %c0_13 = arith.constant 0 : index
    %16 = vector.load %arg12[%c0_12, %c0_13] : memref<8x128xf32, #tpu.memory_space<vmem>>, vector<8x128xf32>
    tpu.vector_store %arg12[%c0_12, %c0_13], %15 {strides = array<i32>} : memref<8x128xf32, #tpu.memory_space<vmem>>, vector<8x128xf32>,
    %c1_i32 = arith.constant 1 : i32
    %17 = arith.cmpi eq, %arg2, %c1_i32 : i32
    %18 = arith.extui %17 : i1 to i32
    %c0_i32_14 = arith.constant 0 : i32
    %19 = arith.cmpi ne, %18, %c0_i32_14 : i32
    scf.if %19 {
      %c0_15 = arith.constant 0 : index
      %c0_16 = arith.constant 0 : index
      %20 = vector.load %arg12[%c0_15, %c0_16] : memref<8x128xf32, #tpu.memory_space<vmem>>, vector<8x128xf32>
      %c0_17 = arith.constant 0 : index
      %c0_18 = arith.constant 0 : index
      %21 = vector.load %arg11[%c0_17, %c0_18] : memref<8x128xf32, #tpu.memory_space<vmem>>, vector<8x128xf32>
      tpu.vector_store %arg11[%c0_17, %c0_18], %20 {strides = array<i32>} : memref<8x128xf32, #tpu.memory_space<vmem>>, vector<8x128xf32>,
    } else {
    }
    return
  }
  func.func @transform_0(%arg0: i32, %arg1: i32, %arg2: i32) -> (i32, i32) {
    %c0_i32 = arith.constant 0 : i32
    return %arg0, %arg2 : i32, i32
  }
  func.func @transform_1(%arg0: i32, %arg1: i32, %arg2: i32) -> (i32, i32) {
    %c0_i32 = arith.constant 0 : i32
    return %arg1, %arg2 : i32, i32
  }
  func.func @transform_2(%arg0: i32, %arg1: i32, %arg2: i32) -> (i32, i32) {
    %c0_i32 = arith.constant 0 : i32
    return %arg1, %arg2 : i32, i32
  }
  func.func @transform_3(%arg0: i32, %arg1: i32, %arg2: i32) -> (i32, i32) {
    %c0_i32 = arith.constant 0 : i32
    %c0_i32_0 = arith.constant 0 : i32
    return %arg1, %c0_i32 : i32, i32
  }
  func.func @transform_4(%arg0: i32, %arg1: i32, %arg2: i32) -> (i32, i32) {
    %c0_i32 = arith.constant 0 : i32
    %c0_i32_0 = arith.constant 0 : i32
    return %c0_i32, %arg2 : i32, i32
  }
  func.func @transform_5(%arg0: i32, %arg1: i32, %arg2: i32) -> (i32, i32) {
    %c0_i32 = arith.constant 0 : i32
    %c0_i32_0 = arith.constant 0 : i32
    return %c0_i32, %arg1 : i32, i32
  }
  func.func @transform_6(%arg0: i32, %arg1: i32, %arg2: i32) -> (i32, i32) {
    %c0_i32 = arith.constant 0 : i32
    %c0_i32_0 = arith.constant 0 : i32
    return %c0_i32, %arg1 : i32, i32
  }
  func.func @transform_7(%arg0: i32, %arg1: i32, %arg2: i32) -> (i32, i32) {
    %c0_i32 = arith.constant 0 : i32
    %c0_i32_0 = arith.constant 0 : i32
    return %c0_i32, %arg1 : i32, i32
  }
  func.func @transform_8(%arg0: i32, %arg1: i32, %arg2: i32) -> (i32, i32) {
    %c0_i32 = arith.constant 0 : i32
    return %arg0, %arg1 : i32, i32
  }
}

</mosaic_0001>

<bundles_post_ra>
// kernel: tpu_custom_call.1
= control target key start
LH: loop header
LB: loop body
LE: loop exit
PB: predicated region body
PF: predicated region fallthrough
CT: control target
= control target key end

     0   :  { %s1683_s0 = inlined_call_operand.vmem [shape: f32[8,256], index: 0, kind: input, shape index: {}]   ;;  %s1684_s1 = inlined_call_operand.hbm [shape: f32[128,256], index: 1, kind: input, shape index: {}]   ;;  %s1685_s2 = inlined_call_operand.hbm [shape: f32[128,256], index: 2, kind: input, shape index: {}]   ;;  %s1686_s3 = inlined_call_operand.vmem [shape: f32[128,1], index: 3, kind: input, shape index: {}]   ;;  %s1687_s4 = inlined_call_operand.vmem [shape: f32[1,256], index: 4, kind: input, shape index: {}]   ;;  %s1688_s5 = inlined_call_operand.vmem [shape: f32[1,128], index: 5, kind: input, shape index: {}]   ;;  %s1689_s6 = inlined_call_operand.vmem [shape: f32[1,128], index: 6, kind: input, shape index: {}]   ;;  %s1690_s7 = inlined_call_operand.vmem [shape: f32[1,128], index: 7, kind: input, shape index: {}]   ;;  %s1691_s8 = inlined_call_operand.hbm [shape: f32[8,128], index: 8, kind: output, shape index: {}]  }
   0x1   :  { %1696 = sst [smem:[#allocation13_spill]] %s1684_s1 }
   0x2   :  { %13 = vsyncpa [#allocation4], 0 }
   0x3   :  { %15 = vsyncpa [#allocation4 + $0x1], 0 }
   0x4   :  { %16 = vsyncpa [#allocation7], 0 }
   0x5   :  { %18 = vsyncpa [#allocation7 + $0x1], 0 }
   0x6   :  { %19 = vsyncpa [#allocation5], 0  ;;  %s1331_s27 = smov 0   ;;  %s1333_s28 = smov 0  }
   0x7   :  { %s1335_s29 = smov 0   ;;  %s1337_s30 = smov 0  }
   0x8   :  { %s1339_s9 = smov 0   ;;  %s1341_s10 = smov 0  }
   0x9 LB: > { %s1692_s11 = sadd.s32 4294967295, %s1274_s10   ;;  %s37_s12 = sadd.s32 1, %s1270_s9  ;;  %s1274_s10 = sphi %s1341_s10, %s25_s10   ;;  %s1270_s9 = sphi %s1339_s9, %s1713_s9   ;;  %s1266_s30 = sphi %s1337_s30, %s1712_s30   ;;  %s1262_s29 = sphi %s1335_s29, %s1711_s29   ;;  %s1258_s28 = sphi %s1333_s28, %s1710_s28   ;;  %s1254_s27 = sphi %s1331_s27, %s1709_s27  }
   0xa   : > { %p38_p0 = scmp.ge.s32.totalorder %s37_s12, 2  ;;  %s81_s13 = sadd.s32 1, %s1262_s29 }
   0xb   : > { %p88_p1 = scmp.ne.s32.totalorder %s1262_s29, %s1258_s28  ;;  %p89_p2 = scmp.eq.s32.totalorder %s1274_s10, 0 }
   0xc   : > { %s1715_s12 = smov (%p38_p0, %s37_s12), 0  ;;  %p94_p4 = scmp.ne.s32.totalorder %s1258_s28, %s1254_s27 }
   0xd   : > { %1697 = sst [smem:[#allocation12_spill]] %s1715_s12  ;;  %p1367_p3 = por %p89_p2, %p88_p1 }
   0xe   : > { %s77_s15 = ssub.s32 %s1270_s9, %s1715_s12  ;;  %p95_p5 = scmp.eq.s32.totalorder %s1692_s11, 0 }
   0xf   : > { %p79_p6 = scmp.eq.s32.totalorder %s77_s15, 0  ;;  %p1069_p8 = scmp.lt.s32.totalorder %s1274_s10, 2 }
  0x10   : > { %p1376_p7 = por %p95_p5, %p94_p4  ;;  %s1385_s18 = sand.u32 1, %s1262_s29  }
  0x11   : > { %s1382_s17 = scalar_select %p79_p6, %s1262_s29, %s81_s13  }
  0x12   : > { %s1699_s16 = scalar_select %p1376_p7, 1, 0 }
  0x13   : > { %s964_s19 = sshll.u32 %s1270_s9, 7  ;;  %s963_s20 = sshll.u32 %s1385_s18, 7 }
  0x14   : > { %s1700_s1 = sld [smem:[#allocation13_spill]]  ;;  %s346_s24 = scalar_lea.vmem [#allocation3], %s963_s20 }
  0x15   : > { %s355_s25 = sshll.u32 %s346_s24, 4  ;;  %p1400_p9 = pnand %p1069_p8, %p1367_p3  ;;  %s1404_s25 = int_to_ptr.vmem [resolvable:$true] %s355_s25 }
  0x16   : > { %s343_s27 = scalar_lea.sflag [#allocation4], %s1385_s18 }
  0x17   : > { %p1132_p12 = pneg %p1400_p9 }
  0x1a   : > { %s1394_s23 = scalar_lea.hbm %s1700_s1, %s964_s19  ;;  %s1135_s21 = scalar_lea.hbm %s1700_s1, 4096 }
  0x1b   : > { %s1130_s13 = scalar_lea.hbm %s1394_s23, 2048  ;;  %p1136_p1 = scmp.lt.u32.totalorder %s1394_s23, %s1700_s1 }
  0x1c   : > { %p1131_p11 = scmp.ne.s32.totalorder %s1394_s23, %s1130_s13  ;;  %p1137_p2 = scmp.lt.u32.totalorder %s1135_s21, %s1130_s13 }
  0x1d   : > { %p1139_p4 = scmp.lt.u32.totalorder %s1130_s13, %s1394_s23 }
  0x1e   : > { %p1133_p13 = pnand %p1132_p12, %p1131_p11  ;;  %p1138_p3 = por %p1137_p2, %p1136_p1 }
  0x20   : > { %p1134_p0 = pneg %p1133_p13  ;;  %p1140_p5 = por %p1139_p4, %p1138_p3 }
  0x22   : > { %p1141_p6 = pnand %p1140_p5, %p1134_p0 }
  0x24   : > { %1144 = shalt.err (!%p1141_p6)
}
  0x25   : > { %s1145_s11 = scalar_lea.vmem %s1404_s25, 2048  ;;  %s1276_s15 = smov [#allocation3]  }
  0x26   : > { %p1146_p8 = scmp.ne.s32.totalorder %s1404_s25, %s1145_s11  ;;  %s1150_s14 = sshll.u32 %s1276_s15, 4  ;;  %s1151_s14 = int_to_ptr.vmem [resolvable:$false] %s1150_s14 }
  0x27   : > { %s1152_s22 = scalar_lea.vmem %s1151_s14, 4096  ;;  %p1153_p10 = scmp.lt.s32.totalorder %s1404_s25, %s1151_s14 }
  0x28   : > { %p1148_p11 = pnand %p1146_p8, %p1132_p12  ;;  %p1154_p1 = scmp.lt.s32.totalorder %s1152_s22, %s1145_s11 }
  0x2a   : > { %p1149_p13 = pneg %p1148_p11  ;;  %p1155_p2 = por %p1154_p1, %p1153_p10 }
  0x2c   : > { %p1156_p3 = pnand %p1155_p2, %p1149_p13 }
  0x2e   : > { %1159 = shalt.err (!%p1156_p3)
}
  0x2f   : > { %s1694_s13 = smov 256   ;;  %s1278_s21 = smov 128  }
  0x30   : > { %s1279_s24 = smov 8   ;;  %p392_p10 = scmp.lt.s32.totalorder %s1274_s10, 3 }
  0x31   : > { %1065 = dma.hbm_to_vmem [thread:$0]  (!%p1400_p9), %s1394_s23, 2048, %s1404_s25, %s343_s27, %s1694_s13, %s1278_s21, %s1279_s24  }
  0x32   : > { %s1444_s14 = scalar_lea.hbm %s1685_s2, %s964_s19  ;;  %p1702_p0 = scmp.ge.s32.totalorder %s1274_s10, 1 }
  0x33   : > { %s369_s1 = scalar_lea.vmem [#allocation6], %s963_s20  ;;  %s366_s23 = scalar_lea.sflag [#allocation7], %s1385_s18 }
  0x34   : > { %p1448_p4 = pnand %p1702_p0, %p392_p10  ;;  %s378_s12 = sshll.u32 %s369_s1, 4  ;;  %s1454_s12 = int_to_ptr.vmem [resolvable:$true] %s378_s12 }
  0x35   : > { %s1160_s25 = scalar_lea.hbm %s1444_s14, 2048  ;;  %s1165_s11 = scalar_lea.hbm %s1685_s2, 4096 }
  0x36   : > { %p1161_p5 = scmp.ne.s32.totalorder %s1444_s14, %s1160_s25  ;;  %p1166_p11 = scmp.lt.u32.totalorder %s1444_s14, %s1685_s2 }
  0x37   : > { %p1167_p13 = scmp.lt.u32.totalorder %s1165_s11, %s1160_s25  ;;  %p1169_p2 = scmp.lt.u32.totalorder %s1160_s25, %s1444_s14 }
  0x38   : > { %p1163_p6 = pnand %p1161_p5, %p1132_p12 }
  0x39   : > { %p1168_p1 = por %p1167_p13, %p1166_p11 }
  0x3a   : > { %p1164_p8 = pneg %p1163_p6 }
  0x3b   : > { %p1170_p3 = por %p1169_p2, %p1168_p1 }
  0x3d   : > { %p1171_p10 = pnand %p1170_p3, %p1164_p8 }
  0x3f   : > { %1174 = shalt.err (!%p1171_p10)
}
  0x40   : > { %s1175_s1 = scalar_lea.vmem %s1454_s12, 2048  ;;  %s1280_s20 = smov [#allocation6]  }
  0x41   : > { %p1176_p0 = scmp.ne.s32.totalorder %s1454_s12, %s1175_s1  ;;  %s1180_s19 = sshll.u32 %s1280_s20, 4  ;;  %s1181_s19 = int_to_ptr.vmem [resolvable:$false] %s1180_s19 }
  0x42   : > { %s1182_s13 = scalar_lea.vmem %s1181_s19, 4096  ;;  %p1183_p7 = scmp.lt.s32.totalorder %s1454_s12, %s1181_s19 }
  0x43   : > { %p1178_p5 = pnand %p1176_p0, %p1132_p12  ;;  %p1184_p11 = scmp.lt.s32.totalorder %s1182_s13, %s1175_s1 }
  0x45   : > { %p1179_p6 = pneg %p1178_p5  ;;  %p1185_p13 = por %p1184_p11, %p1183_p7 }
  0x47   : > { %p1186_p1 = pnand %p1185_p13, %p1179_p6 }
  0x49   : > { %1189 = shalt.err (!%p1186_p1)
}
  0x4a   : > { %s1704_s25 = smov 256   ;;  %396 = sbr.rel (%p1448_p4) target bundleno = 549 (0x225), region = 52 }
  0x4b   : > { %1068 = dma.hbm_to_vmem [thread:$0]  (!%p1400_p9), %s1444_s14, 2048, %s1454_s12, %s366_s23, %s1704_s25, %s1278_s21, %s1279_s24  }
  0x4c   : > { %s398_s27 = sand.u32 (!%p1448_p4), 1, %s1258_s28   ;;  %p1705_p7 = scmp.ne.s32.totalorder (!%p1448_p4), %s1699_s16, 0 }
  0x4d   : > { %s968_s11 = sshll.u32 (!%p1448_p4), %s398_s27, 7  ;;  %s399_s15 = scalar_lea.sflag (!%p1448_p4), [#allocation4], %s398_s27 }
  0x4e   : > { %s1488_s1 = scalar_lea.vmem (!%p1448_p4), [#allocation3], %s968_s11 }
  0x51   : > { %1241 = dma.done.wait (%p1705_p7), %s399_s15, 2048  }
  0x52   : > { %1243 = vsyncadd (%p1705_p7), %s399_s15, 4294965248  ;;  %s408_s18 = scalar_lea.sflag [#allocation7], %s398_s27  ;;  %s1494_s26 = scalar_lea.vmem [#allocation6], %s968_s11 }
  0x53   : > { %1245 = dma.done.wait (%p1705_p7), %s408_s18, 2048  }
  0x54   : > { %1247 = vsyncadd (%p1705_p7), %s408_s18, 4294965248  ;;  %p471_p9 = scmp.lt.s32.totalorder %s1266_s30, 1  ;;  %p971_p12 = scmp.ne.s32.totalorder %s1266_s30, 0 }
  0x55   : > { %v501_v0 = vld [vmem:[%s1688_s5] sm:$0x1] (!%p971_p12)  ;;  %v507_v3 = vlaneseq (!%p971_p12) }
  0x56   : > { %s1502_s12 = scalar_select %p471_p9, %s1266_s30, 1 }
  0x57   : > { %500 = sbr.rel (%p971_p12) target bundleno = 96 (0x60), region = 64  ;;  %v502_v1 = vld [vmem:[%s1689_s6] sm:$0x1] (!%p971_p12)  ;;  %v508_v5 = vshrl.u32 (!%p971_p12), %v507_v3, 7 }
  0x58   : > { %s970_s21 = sshll.u32 %s1502_s12, 3  ;;  %s487_s22 = scalar_lea.vmem %s1687_s4, %s1502_s12  ;;  %v503_v2 = vld [vmem:[%s1690_s7] sm:$0x1] (!%p971_p12) }
  0x59   : > { %s1512_s19 = scalar_lea.vmem %s1683_s0, %s970_s21  ;;  %v504_v4 = vmul.f32 (!%p971_p12), %v503_v2, %v502_v1  ;;  %v509_v7 = vsub.s32 (!%p971_p12), 0, %v508_v5 }
  0x5b   : > { %v505_v6 = vadd.f32 (!%p971_p12), %v504_v4, %v501_v0 }
  0x5d   : > { %v510_v8 = vrot.slane (!%p971_p12), %v505_v6, %v509_v7 }
  0x5f   : > { %512 = vst [vmem:[#allocation2] sm:$0xff] %v510_v8 }
  0x60 PF: > { %v547_v9 = vld [vmem:[%s1686_s3 + $0x10] sm:$0xff]  ;;  %v545_v10 = vld [vmem:[%s1686_s3] sm:$0xff]  ;;  %v1281_v11 = vmov 0   ;;  %v548_v12 = vld [vmem:[%s1686_s3 + $0x18] sm:$0xff]  ;;  %v1282_v18 = vmov 0.0|0.0   ;;  %vm1283_vm0 = vmmov 0  }
  0x61   : > { %1129 = vset.pattern.permute.xlu1 %v1281_v11  ;;  %1128 = vset.pattern.permute.xlu0 %v1281_v11  ;;  %v546_v13 = vld [vmem:[%s1686_s3 + $0x8] sm:$0xff]  ;;  %v549_v15 = vld [vmem:[%s1686_s3 + $0x20] sm:$0xff]  ;;  %v552_v16 = vld [vmem:[%s1686_s3 + $0x38] sm:$0xff]  ;;  %v1284_v27 = vmov 0.0   ;;  %p973_p4 = scmp.ne.s32.totalorder %s1266_s30, 1 }
  0x62   : > { %574 = vperm.xlu1 %1129, %v547_v9   ;;  %564 = vperm.xlu0 %1128, %v545_v10   ;;  %v550_v14 = vld [vmem:[%s1686_s3 + $0x28] sm:$0xff]  ;;  %v551_v17 = vld [vmem:[%s1686_s3 + $0x30] sm:$0xff]  ;;  %v553_v20 = vld [vmem:[%s1686_s3 + $0x40] sm:$0xff] }
  0x63   : > { %1030 = vmatprep.subr.bf16.mxu0 %v1282_v18  ;;  %v554_v19 = vld [vmem:[%s1686_s3 + $0x48] sm:$0xff]  ;;  %v556_v21 = vld [vmem:[%s1686_s3 + $0x58] sm:$0xff]  ;;  %v555_v22 = vld [vmem:[%s1686_s3 + $0x50] sm:$0xff]  ;;  %1027 = vmatprep.mubr.msk.f32.mxu0 %vm1283_vm0, %v1284_v27 }
  0x64   : > { %v558_v23 = vld [vmem:[%s1686_s3 + $0x68] sm:$0xff]  ;;  %v557_v24 = vld [vmem:[%s1686_s3 + $0x60] sm:$0xff]  ;;  %v560_v25 = vld [vmem:[%s1686_s3 + $0x78] sm:$0xff] }
  0x65   : > { %v559_v26 = vld [vmem:[%s1686_s3 + $0x70] sm:$0xff]  ;;  %v1578_v28 = vld [vmem:[%s487_s22] ss:$0 sm:$0xff]  ;;  %v529_v32 = vld [vmem:[%s1494_s26] sm:$0xff] }
  0x66   : > { %579 = vperm.xlu1 %1129, %v548_v12   ;;  %569 = vperm.xlu0 %1128, %v546_v13   ;;  %v530_v34 = vld [vmem:[%s1494_s26 + $0x8] sm:$0xff]  ;;  %v513_v38 = vld [vmem:[%s1488_s1] sm:$0xff]  ;;  %v531_v43 = vld [vmem:[%s1494_s26 + $0x10] sm:$0xff] }
  0x67   : > { %v514_v39 = vld [vmem:[%s1488_s1 + $0x8] sm:$0xff]  ;;  %v532_v44 = vld [vmem:[%s1494_s26 + $0x18] sm:$0xff]  ;;  %v515_v50 = vld [vmem:[%s1488_s1 + $0x10] sm:$0xff] }
  0x68   : > { %v516_v51 = vld [vmem:[%s1488_s1 + $0x18] sm:$0xff]  ;;  %v534_v58 = vld [vmem:[%s1494_s26 + $0x28] sm:$0xff]  ;;  %v533_v59 = vld [vmem:[%s1494_s26 + $0x20] sm:$0xff] }
  0x69   : > { %v518_v63 = vld [vmem:[%s1488_s1 + $0x28] sm:$0xff]  ;;  %v517_v0 = vld [vmem:[%s1488_s1 + $0x20] sm:$0xff]  ;;  %v536_v7 = vld [vmem:[%s1494_s26 + $0x38] sm:$0xff] }
  0x6a   : > { %589 = vperm.xlu1 %1129, %v550_v14   ;;  %584 = vperm.xlu0 %1128, %v549_v15   ;;  %v535_v8 = vld [vmem:[%s1494_s26 + $0x30] sm:$0xff]  ;;  %v520_v12 = vld [vmem:[%s1488_s1 + $0x38] sm:$0xff]  ;;  %v521_v27 = vld [vmem:[%s1488_s1 + $0x40] sm:$0xff] }
  0x6b   : > { %v519_v13 = vld [vmem:[%s1488_s1 + $0x30] sm:$0xff] }
  0x6e   : > { %599 = vperm.xlu1 %1129, %v552_v16   ;;  %594 = vperm.xlu0 %1128, %v551_v17  }
  0x72   : > { %609 = vperm.xlu1 %1129, %v554_v19   ;;  %604 = vperm.xlu0 %1128, %v553_v20  }
  0x76   : > { %619 = vperm.xlu1 %1129, %v556_v21   ;;  %614 = vperm.xlu0 %1128, %v555_v22   ;;  %v538_v21 = vld [vmem:[%s1494_s26 + $0x48] sm:$0xff]  ;;  %v537_v22 = vld [vmem:[%s1494_s26 + $0x40] sm:$0xff] }
  0x7a   : > { %629 = vperm.xlu1 %1129, %v558_v23   ;;  %624 = vperm.xlu0 %1128, %v557_v24  }
  0x7e   : > { %639 = vperm.xlu1 %1129, %v560_v25   ;;  %634 = vperm.xlu0 %1128, %v559_v26   ;;  %v522_v26 = vld [vmem:[%s1488_s1 + $0x48] sm:$0xff] }
  0xe1   : > { %v575_v29 = vpop.permute.xlu1 %574  ;;  %v565_v30 = vpop.permute.xlu0 %564 }
  0xe2   : > { %v648_v31 = vmul.f32 %v1578_v28, %v565_v30  ;;  %v650_v40 = vmul.f32 %v1578_v28, %v575_v29 }
  0xe4   : > { %v664_v35 = vmul.f32 %v648_v31, %v529_v32  ;;  %v666_v47 = vmul.f32 %v650_v40, %v531_v43  ;;  %v524_v40 = vld [vmem:[%s1488_s1 + $0x58] sm:$0xff] }
  0xe5   : > { %v570_v33 = vpop.permute.xlu0 %569  ;;  %v580_v37 = vpop.permute.xlu1 %579 }
  0xe6   : > { %v649_v36 = vmul.f32 %v1578_v28, %v570_v33  ;;  %v651_v41 = vmul.f32 %v1578_v28, %v580_v37  ;;  %v680_v45 = vadd.f32 %v664_v35, %v513_v38  ;;  %v682_v54 = vadd.f32 %v666_v47, %v515_v50  ;;  %v540_v35 = vld [vmem:[%s1494_s26 + $0x58] sm:$0xff] }
  0xe8   : > { %v665_v42 = vmul.f32 %v649_v36, %v530_v34  ;;  %v667_v48 = vmul.f32 %v651_v41, %v532_v44  ;;  %v539_v36 = vld [vmem:[%s1494_s26 + $0x50] sm:$0xff] }
  0xe9   : > { %v590_v52 = vpop.permute.xlu1 %589  ;;  %v585_v53 = vpop.permute.xlu0 %584  ;;  %v523_v41 = vld [vmem:[%s1488_s1 + $0x50] sm:$0xff] }
  0xea   : > { %v681_v46 = vadd.f32 %v665_v42, %v514_v39  ;;  %v683_v55 = vadd.f32 %v667_v48, %v516_v51  ;;  %v653_v56 = vmul.f32 %v1578_v28, %v590_v52  ;;  %v652_v57 = vmul.f32 %v1578_v28, %v585_v53  ;;  %v542_v48 = vld [vmem:[%s1494_s26 + $0x68] sm:$0xff] }
  0xeb   : > { %v526_v53 = vld [vmem:[%s1488_s1 + $0x68] sm:$0xff] }
  0xec   : > { %v1031_v49 = vpack.c.bf16 %v681_v46, %v680_v45  ;;  %v669_v60 = vmul.f32 %v653_v56, %v534_v58  ;;  %v668_v61 = vmul.f32 %v652_v57, %v533_v59  ;;  %v1034_v62 = vpack.c.bf16 %v683_v55, %v682_v54  ;;  %v525_v54 = vld [vmem:[%s1488_s1 + $0x60] sm:$0xff] }
  0xed   : > { %v600_v1 = vpop.permute.xlu1 %599  ;;  %v595_v2 = vpop.permute.xlu0 %594 }
  0xee   : > { %1032 = vmatpush3.bf16.xpose.msra.mxu0 %v1031_v49  ;;  %v685_v3 = vadd.f32 %v669_v60, %v518_v63  ;;  %v684_v4 = vadd.f32 %v668_v61, %v517_v0  ;;  %v655_v5 = vmul.f32 %v1578_v28, %v600_v1  ;;  %v654_v6 = vmul.f32 %v1578_v28, %v595_v2  ;;  %v541_v49 = vld [vmem:[%s1494_s26 + $0x60] sm:$0xff]  ;;  %v544_v61 = vld [vmem:[%s1494_s26 + $0x78] sm:$0xff] }
  0xef   : > { %1033 = vmatprep.subr.bf16.mxu0 %v1282_v18  ;;  %v528_v2 = vld [vmem:[%s1488_s1 + $0x78] sm:$0xff] }
  0xf0   : > { %v671_v9 = vmul.f32 %v655_v5, %v536_v7  ;;  %v670_v10 = vmul.f32 %v654_v6, %v535_v8  ;;  %v1037_v11 = vpack.c.bf16 %v685_v3, %v684_v4  ;;  %v527_v3 = vld [vmem:[%s1488_s1 + $0x70] sm:$0xff]  ;;  %v697_v7 = vld [vmem:[%s1512_s19] sm:$0xff] }
  0xf1   : > { %v610_v14 = vpop.permute.xlu1 %609  ;;  %v605_v15 = vpop.permute.xlu0 %604  ;;  %v696_v8 = vld [vmem:[#allocation2] sm:$0xff] }
  0xf2   : > { %v687_v16 = vadd.f32 %v671_v9, %v520_v12  ;;  %v686_v17 = vadd.f32 %v670_v10, %v519_v13  ;;  %v657_v19 = vmul.f32 %v1578_v28, %v610_v14  ;;  %v656_v20 = vmul.f32 %v1578_v28, %v605_v15 }
  0xf4   : > { %v673_v23 = vmul.f32 %v657_v19, %v538_v21  ;;  %v672_v24 = vmul.f32 %v656_v20, %v537_v22  ;;  %v1040_v25 = vpack.c.bf16 %v687_v16, %v686_v17 }
  0xf5   : > { %v620_v29 = vpop.permute.xlu1 %619  ;;  %v615_v30 = vpop.permute.xlu0 %614 }
  0xf6   : > { %1035 = vmatpush3.bf16.xpose.msra.mxu0 %v1034_v62  ;;  %v689_v31 = vadd.f32 %v673_v23, %v522_v26  ;;  %v688_v32 = vadd.f32 %v672_v24, %v521_v27  ;;  %v659_v33 = vmul.f32 %v1578_v28, %v620_v29  ;;  %v658_v34 = vmul.f32 %v1578_v28, %v615_v30  ;;  %v543_v62 = vld [vmem:[%s1494_s26 + $0x70] sm:$0xff] }
  0xf7   : > { %1036 = vmatprep.subr.bf16.mxu0 %v1282_v18 }
  0xf8   : > { %v675_v37 = vmul.f32 %v659_v33, %v540_v35  ;;  %v674_v38 = vmul.f32 %v658_v34, %v539_v36  ;;  %v1043_v39 = vpack.c.bf16 %v689_v31, %v688_v32 }
  0xf9   : > { %v630_v42 = vpop.permute.xlu1 %629  ;;  %v625_v43 = vpop.permute.xlu0 %624 }
  0xfa   : > { %v691_v44 = vadd.f32 %v675_v37, %v524_v40  ;;  %v690_v45 = vadd.f32 %v674_v38, %v523_v41  ;;  %v661_v46 = vmul.f32 %v1578_v28, %v630_v42  ;;  %v660_v47 = vmul.f32 %v1578_v28, %v625_v43 }
  0xfc   : > { %v677_v50 = vmul.f32 %v661_v46, %v542_v48  ;;  %v676_v51 = vmul.f32 %v660_v47, %v541_v49  ;;  %v1046_v52 = vpack.c.bf16 %v691_v44, %v690_v45 }
  0xfd   : > { %v640_v55 = vpop.permute.xlu1 %639  ;;  %v635_v56 = vpop.permute.xlu0 %634 }
  0xfe   : > { %1038 = vmatpush3.bf16.xpose.msra.mxu0 %v1037_v11  ;;  %v693_v57 = vadd.f32 %v677_v50, %v526_v53  ;;  %v692_v58 = vadd.f32 %v676_v51, %v525_v54  ;;  %v663_v59 = vmul.f32 %v1578_v28, %v640_v55  ;;  %v662_v60 = vmul.f32 %v1578_v28, %v635_v56 }
  0xff   : > { %1039 = vmatprep.subr.bf16.mxu0 %v1282_v18 }
 0x100   : > { %v679_v63 = vmul.f32 %v663_v59, %v544_v61  ;;  %v678_v0 = vmul.f32 %v662_v60, %v543_v62  ;;  %v1049_v1 = vpack.c.bf16 %v693_v57, %v692_v58 }
 0x102   : > { %v695_v4 = vadd.f32 %v679_v63, %v528_v2  ;;  %v694_v5 = vadd.f32 %v678_v0, %v527_v3 }
 0x104   : > { %v1052_v6 = vpack.c.bf16 %v695_v4, %v694_v5 }
 0x106   : > { %1041 = vmatpush3.bf16.xpose.msra.mxu0 %v1040_v25 }
 0x107   : > { %1042 = vmatprep.subr.bf16.mxu0 %v1282_v18 }
 0x10e   : > { %1044 = vmatpush3.bf16.xpose.msra.mxu0 %v1043_v39 }
 0x10f   : > { %1045 = vmatprep.subr.bf16.mxu0 %v1282_v18 }
 0x116   : > { %1047 = vmatpush3.bf16.xpose.msra.mxu0 %v1046_v52 }
 0x117   : > { %1048 = vmatprep.subr.bf16.mxu0 %v1282_v18 }
 0x11e   : > { %1050 = vmatpush3.bf16.xpose.msra.mxu0 %v1049_v1 }
 0x11f   : > { %1051 = vmatprep.subr.bf16.mxu0 %v1282_v18 }
 0x126   : > { %1053 = vmatpush3.bf16.xpose.msra.mxu0 %v1052_v6 }
 0x12d   : > { %1028 = vmatmul.mubr.f32.vlgmr.msra.gmra.mrb[0].mxu0 %v697_v7 }
 0x1fd   : > { %773 = sbr.rel (%p973_p4) target bundleno = 524 (0x20c), region = 68 }
 0x200   : > { %v764_v9 = vpop.f32.mrb[0].mxu0 }
 0x201   : > { %v768_v10 = vadd.f32 %v764_v9, %v696_v8  ;;  %v1029_v28 = vpop.f32.mrb[1].mxu0 }
 0x203   : > { %769 = vst [vmem:[#allocation2] sm:$0xff] %v768_v10 }
 0x20a   : > { %v774_v11 = vld [vmem:[#allocation2] sm:$0xff] }
 0x20b   : > { %775 = vst [vmem:[#allocation8] sm:$0xff] %v774_v11 }
 0x20c PF: > { %s1706_s1 = sadd.s32 4294967295, %s1274_s10   ;;  %s1285_s12 = smov [#allocation8]  }
 0x20d   : > { %p1639_p8 = scmp.eq.s32.totalorder %s1706_s1, 1  ;;  %s786_s22 = sshll.u32 %s1285_s12, 4  ;;  %s787_s22 = int_to_ptr.vmem [resolvable:$true] %s786_s22 }
 0x20e   : > { %s1190_s19 = scalar_lea.vmem %s787_s22, 128  ;;  %p1197_p0 = scmp.lt.s32.totalorder %s787_s22, %s787_s22 }
 0x20f   : > { %p1191_p2 = scmp.ne.s32.totalorder %s787_s22, %s1190_s19  ;;  %p1198_p5 = scmp.lt.s32.totalorder %s1190_s19, %s1190_s19 }
 0x211   : > { %p1192_p3 = pnand %p1191_p2, %p1639_p8  ;;  %p1199_p6 = por %p1198_p5, %p1197_p0 }
 0x213   : > { %p1193_p10 = pneg %p1192_p3 }
 0x215   : > { %p1200_p11 = pnand %p1199_p6, %p1193_p10 }
 0x217   : > { %1203 = shalt.err (!%p1200_p11)
}
 0x218   : > { %s1204_s15 = scalar_lea.hbm %s1691_s8, 128 }
 0x219   : > { %p1205_p13 = scmp.ne.s32.totalorder %s1691_s8, %s1204_s15  ;;  %p1210_p9 = scmp.lt.u32.totalorder %s1204_s15, %s1691_s8 }
 0x21b   : > { %p1206_p1 = pnand %p1205_p13, %p1639_p8 }
 0x21d   : > { %p1207_p7 = pneg %p1206_p1 }
 0x21f   : > { %p1212_p12 = pnand %p1210_p9, %p1207_p7 }
 0x221   : > { %1215 = shalt.err (!%p1212_p12)
}
 0x222   : > { %1059 = dma.vmem_to_hbm [thread:$0]  (%p1639_p8), %s787_s22, 128, %s1691_s8, [#allocation5]  }
 0x223   : > { %1249 = dma.done.wait (%p1639_p8), [#allocation5], 128  }
 0x224   : > { %1251 = vsyncadd (%p1639_p8), [#allocation5], 4294967168 }
 0x225 PF: > { %s25_s10 = sadd.s32 1, %s1274_s10   ;;  %s1708_s16 = sld [smem:[#allocation12_spill]] }
 0x226   : > { %p22_p4 = scmp.ge.s32.totalorder %s25_s10, 4   ;;  %s1709_s27 = smov %s1258_s28 }
 0x227   : > { %s1710_s28 = smov %s1262_s29  ;;  %s1711_s29 = smov %s1382_s17 }
 0x228   : > { %s1712_s30 = smov %s1270_s9  ;;  %24 = sbr.rel (!%p22_p4) target bundleno = 9 (0x9), region = 129 }
 0x22b   : > { %s1713_s9 = smov %s1708_s16 }
 0x22f   :  { %799 = vsyncpa [#allocation4], 1 }
 0x230   :  { %801 = vsyncpa [#allocation4 + $0x1], 1 }
 0x231   :  { %802 = vsyncpa [#allocation7], 1 }
 0x232   :  { %804 = vsyncpa [#allocation7 + $0x1], 1 }
 0x233   :  { %805 = vsyncpa [#allocation5], 1 }
 0x234   :  { %807 = vsyncpa [#allocation5 + $0x1], 1 }

</bundles_post_ra>
